<compile_context>
chip_gen: v7x
topology: tpu7x:2x2x1
jax: 0.10.0
libtpu: 0.0.40
codegen_flags: <defaults>
</compile_context>

<pallas_src>
import functools

import jax
import jax.numpy as jnp
from jax.experimental import pallas as pl
from jax.experimental.pallas import tpu as pltpu

_THRESHOLD = 20.0                      # PyTorch F.softplus default threshold
_LANE_CHOICES = (8192, 4096, 2048, 1024, 512, 256, 128)


@functools.lru_cache(maxsize=1)
def _tpu_generation_params():
    """Returns (tile_bytes, vmem_limit_bytes_or_None, has_bf16_eup)."""
    try:
        kind = jax.devices()[0].device_kind.lower()
    except Exception:  # pragma: no cover - defensive
        kind = ""
    if "v7" in kind or "7x" in kind:
        # v7x: ~3.2 TB/s HBM, 64 MiB physical VMEM.  8 MiB tiles -> 32 MiB
        # double-buffered residency; raise the scoped budget to 40 MiB.
        return 8 * 1024 * 1024, 40 << 20, True
    if "v6" in kind:
        # v6e: 4 MiB tiles (16 MiB residency) inside the 32 MiB scoped default.
        return 4 * 1024 * 1024, 32 << 20, True
    # v5e / older / unknown: 2 MiB tiles (8 MiB residency) fit the 16 MiB
    # scoped-VMEM default with headroom for Mosaic internal scratch.
    return 2 * 1024 * 1024, None, False


def _constraint_kernel(x_ref, o_ref, *, beta, eps, threshold, compute_dtype):
    x = x_ref[...]
    # Transcendentals run in `compute_dtype` (bf16 on v6e/v7x for bf16 inputs,
    # f32 otherwise).  Linear-branch select and +eps are always done in f32.
    xc = x.astype(compute_dtype)
    bx = beta * xc
    big = bx > threshold                                  # linear branch
    bx_safe = jnp.where(big, jnp.zeros_like(bx), bx)      # keep exp() finite
    soft = jnp.log1p(jnp.exp(bx_safe)).astype(jnp.float32) * (1.0 / beta)
    y = jnp.where(big, x.astype(jnp.float32), soft) + eps
    o_ref[...] = y.astype(o_ref.dtype)


def _softplus_eps_jnp(x, eps, beta):
    """Pure-jnp reference / tail path (f32 math, cast back to input dtype)."""
    xf = x.astype(jnp.float32)
    bx = beta * xf
    sp = jnp.where(bx > _THRESHOLD, xf,
                   jnp.log1p(jnp.exp(jnp.minimum(bx, _THRESHOLD))) / beta)
    return (sp + eps).astype(x.dtype)


def _pick_lane_width(n):
    """Widest lane dim (multiple of 128) dividing n, or None."""
    for w in _LANE_CHOICES:
        if n % w == 0:
            return w
    return None


def _run_kernel_2d(flat, width, eps, beta, compute_dtype, tile_bytes, vmem_limit):
    """Run the elementwise kernel on a (rows, width) lane-dense view of `flat`."""
    n = flat.size
    rows = n // width
    x2d = flat.reshape(rows, width)
    itemsize = jnp.dtype(flat.dtype).itemsize

    target_rows = max(8, tile_bytes // (width * itemsize))
    if target_rows >= rows:
        row_tile = rows                     # single full-extent block
    else:
        base = (target_rows // 8) * 8
        row_tile = base
        # Prefer a multiple-of-8 divisor of `rows` near the target size so the
        # last grid step isn't a short masked partial block; never shrink the
        # tile below half the target.
        cand = base
        lo = max(8, base // 2)
        while cand >= lo:
            if rows % cand == 0:
                row_tile = cand
                break
            cand -= 8
    grid_r = pl.cdiv(rows, row_tile)

    kernel = functools.partial(
        _constraint_kernel,
        beta=float(beta),
        eps=float(eps),
        threshold=_THRESHOLD,
        compute_dtype=compute_dtype,
    )

    compiler_kwargs = dict(dimension_semantics=("parallel",))
    if vmem_limit is not None:
        compiler_kwargs["vmem_limit_bytes"] = int(vmem_limit)

    cost = pl.CostEstimate(
        flops=int(5 * n),
        transcendentals=int(2 * n),
        bytes_accessed=int(2 * n * itemsize),
    )

    return pl.pallas_call(
        kernel,
        out_shape=jax.ShapeDtypeStruct((rows, width), flat.dtype),
        grid=(grid_r,),
        in_specs=[pl.BlockSpec((row_tile, width), lambda i: (i, 0))],
        out_specs=pl.BlockSpec((row_tile, width), lambda i: (i, 0)),
        compiler_params=pltpu.CompilerParams(**compiler_kwargs),
        cost_estimate=cost,
    )(x2d)


@functools.partial(jax.jit, static_argnames=("eps", "beta"))
def constraint_forward(x, eps=1e-12, beta=1.0):
    """Elementwise softplus(x, beta) + eps via a Pallas TPU kernel."""
    orig_shape = x.shape
    orig_dtype = x.dtype
    n = x.size

    tile_bytes, vmem_limit, has_bf16_eup = _tpu_generation_params()
    compute_dtype = (jnp.bfloat16
                     if (has_bf16_eup and orig_dtype == jnp.bfloat16)
                     else jnp.float32)

    flat = x.reshape(-1)
    width = _pick_lane_width(n)

    if width is not None:
        out = _run_kernel_2d(flat, width, eps, beta, compute_dtype,
                             tile_bytes, vmem_limit)
        return out.reshape(orig_shape)

    # Ragged size: kernel on the 128-aligned prefix, plain-jnp on the <128
    # element tail.  No full-array pad/copy of the input.
    n_main = (n // 128) * 128
    tail_out = _softplus_eps_jnp(flat[n_main:], eps, beta)
    if n_main == 0:
        return tail_out.reshape(orig_shape)
    main_width = _pick_lane_width(n_main)
    main_out = _run_kernel_2d(flat[:n_main], main_width, eps, beta,
                              compute_dtype, tile_bytes, vmem_limit)
    return jnp.concatenate([main_out.reshape(-1), tail_out]).reshape(orig_shape)


if __name__ == "__main__":
    key = jax.random.PRNGKey(0)

    # NCHW activation consistent with a typical Constraint input.
    x = jax.random.normal(key, (2, 4, 16, 16), dtype=jnp.float32) * 5.0
    y = constraint_forward(x, eps=1e-12, beta=1.0)
    jax.block_until_ready(y)
    ref = _softplus_eps_jnp(x, 1e-12, 1.0)
    assert y.shape == x.shape and y.dtype == x.dtype
    assert jnp.allclose(y, ref, atol=1e-5, rtol=1e-5)

    # Ragged size (exercises the aligned-prefix kernel + jnp-tail path).
    x2 = jax.random.normal(jax.random.PRNGKey(1), (3, 7, 13), dtype=jnp.float32) * 3.0
    y2 = constraint_forward(x2, eps=1e-12, beta=1.0)
    jax.block_until_ready(y2)
    ref2 = _softplus_eps_jnp(x2, 1e-12, 1.0)
    assert y2.shape == x2.shape and y2.dtype == x2.dtype
    assert jnp.allclose(y2, ref2, atol=1e-5, rtol=1e-5)

    # bf16 input (exercises the bf16-EUP transcendental path on v6e/v7x).
    x3 = (jax.random.normal(jax.random.PRNGKey(2), (2, 4, 16, 16),
                            dtype=jnp.float32) * 5.0).astype(jnp.bfloat16)
    y3 = constraint_forward(x3, eps=1e-12, beta=1.0)
    jax.block_until_ready(y3)
    ref3 = _softplus_eps_jnp(x3, 1e-12, 1.0)
    assert y3.shape == x3.shape and y3.dtype == x3.dtype
    assert jnp.allclose(y3.astype(jnp.float32), ref3.astype(jnp.float32),
                        atol=5e-2, rtol=5e-2)

    print("KERNEL_OK")
</pallas_src>

<mosaic_0001>
module attributes {stable_mosaic.version = 11 : i64} {
  func.func @_constraint_kernel(%arg0: i32, %arg1: memref<1x2048xf32, #tpu.memory_space<vmem>>, %arg2: memref<1x2048xf32, #tpu.memory_space<vmem>>) attributes {dimension_semantics = [#tpu.dimension_semantics<parallel>], iteration_bounds = array<i64: 1>, scalar_prefetch = 0 : i64, scratch_operands = 0 : i64, tpu.core_type = #tpu.core_type<tc>, window_params = [{transform_indices = @transform_0, window_bounds = array<i64: 1, 2048>}, {transform_indices = @transform_1, window_bounds = array<i64: 1, 2048>}]} {
    %c0 = arith.constant 0 : index
    %c0_0 = arith.constant 0 : index
    %0 = vector.load %arg1[%c0, %c0_0] : memref<1x2048xf32, #tpu.memory_space<vmem>>, vector<1x2048xf32>
    %cst = arith.constant 1.000000e+00 : f32
    %1 = vector.broadcast %cst : f32 to vector<1x2048xf32>
    %2 = arith.mulf %1, %0 : vector<1x2048xf32>
    %cst_1 = arith.constant 2.000000e+01 : f32
    %3 = vector.broadcast %cst_1 : f32 to vector<1x2048xf32>
    %4 = arith.cmpf ogt, %2, %3 : vector<1x2048xf32>
    %cst_2 = arith.constant 0.000000e+00 : f32
    %5 = vector.broadcast %cst_2 : f32 to vector<1x2048xf32>
    %6 = arith.select %4, %5, %2 : vector<1x2048xi1>, vector<1x2048xf32>
    %7 = math.exp %6 : vector<1x2048xf32>
    %8 = math.log1p %7 : vector<1x2048xf32>
    %cst_3 = arith.constant 1.000000e+00 : f32
    %9 = vector.broadcast %cst_3 : f32 to vector<1x2048xf32>
    %10 = arith.mulf %8, %9 : vector<1x2048xf32>
    %11 = arith.select %4, %0, %10 : vector<1x2048xi1>, vector<1x2048xf32>
    %cst_4 = arith.constant 9.99999996E-13 : f32
    %12 = vector.broadcast %cst_4 : f32 to vector<1x2048xf32>
    %13 = arith.addf %11, %12 : vector<1x2048xf32>
    %c0_5 = arith.constant 0 : index
    %c0_6 = arith.constant 0 : index
    %14 = vector.load %arg2[%c0_5, %c0_6] : memref<1x2048xf32, #tpu.memory_space<vmem>>, vector<1x2048xf32>
    tpu.vector_store %arg2[%c0_5, %c0_6], %13 {strides = array<i32>} : memref<1x2048xf32, #tpu.memory_space<vmem>>, vector<1x2048xf32>,
    return
  }
  func.func @transform_0(%arg0: i32) -> (i32, i32) {
    %c0_i32 = arith.constant 0 : i32
    %c0_i32_0 = arith.constant 0 : i32
    return %arg0, %c0_i32 : i32, i32
  }
  func.func @transform_1(%arg0: i32) -> (i32, i32) {
    %c0_i32 = arith.constant 0 : i32
    %c0_i32_0 = arith.constant 0 : i32
    return %arg0, %c0_i32 : i32, i32
  }
}

</mosaic_0001>

<bundles_post_ra>
// kernel: constraint_forward.1
= control target key start
LH: loop header
LB: loop body
LE: loop exit
PB: predicated region body
PF: predicated region fallthrough
CT: control target
= control target key end

     0   :  { %s80_s0 = inlined_call_operand.vmem [shape: f32[1,2048], index: 0, kind: input, shape index: {}]   ;;  %s81_s1 = inlined_call_operand.vmem [shape: f32[1,2048], index: 1, kind: output, shape index: {}]  }
   0x1   :  { %v8_v0 = vld [vmem:[%s80_s0] sm:$0xff]  ;;  %v9_v1 = vld [vmem:[%s80_s0 + $0x8] sm:$0xff] }
   0x2   :  { %vm10_vm0 = vcmp.gt.f32.partialorder %v8_v0, 20.0  ;;  %vm11_vm1 = vcmp.gt.f32.partialorder %v9_v1, 20.0 }
   0x3   :  { %v12_v2 = vsel %vm10_vm0, 0.0, %v8_v0  ;;  %v13_v3 = vsel %vm11_vm1, 0.0, %v9_v1 }
   0x4   :  { %v14_v4 = vmul.f32 1.442695, %v12_v2  ;;  %v16_v5 = vmul.f32 1.442695, %v13_v3 }
   0x6   :  { %46 = vpow2.f32 %v14_v4 }
   0x7   :  { %48 = vpow2.f32 %v16_v5 }
  0x10   :  { %v47_v6 = vpop.eup %46 }
  0x11   :  { %v49_v7 = vpop.eup %48  ;;  %v18_v8 = vadd.f32 1.0, %v47_v6  ;;  %v21_v10 = vmul.f32 -0.5, %v47_v6  ;;  %v24_v13 = vand.u32 2147483647, %v47_v6 }
  0x12   :  { %v27_v9 = vadd.f32 1.0, %v49_v7  ;;  %v30_v11 = vmul.f32 -0.5, %v49_v7  ;;  %v33_v15 = vand.u32 2147483647, %v49_v7 }
  0x13   :  { %50 = vlog2.f32 %v18_v8  ;;  %v22_v12 = vadd.f32 1.0, %v21_v10  ;;  %vm25_vm2 = vcmp.lt.f32.partialorder %v24_v13, 0.0004427343 }
  0x14   :  { %52 = vlog2.f32 %v27_v9  ;;  %v31_v14 = vadd.f32 1.0, %v30_v11  ;;  %vm34_vm3 = vcmp.lt.f32.partialorder %v33_v15, 0.0004427343 }
  0x15   :  { %v23_v16 = vmul.f32 %v47_v6, %v22_v12 }
  0x16   :  { %v32_v18 = vmul.f32 %v49_v7, %v31_v14 }
  0x1d   :  { %v51_v17 = vpop.eup %50 }
  0x1e   :  { %v53_v19 = vpop.eup %52  ;;  %v20_v20 = vmul.f32 0.6931472, %v51_v17 }
  0x1f   :  { %v29_v21 = vmul.f32 0.6931472, %v53_v19 }
  0x20   :  { %v26_v22 = vsel %vm25_vm2, %v23_v16, %v20_v20 }
  0x21   :  { %v36_v23 = vsel %vm10_vm0, %v8_v0, %v26_v22  ;;  %v35_v24 = vsel %vm34_vm3, %v32_v18, %v29_v21 }
  0x22   :  { %v38_v25 = vadd.f32 1e-12, %v36_v23  ;;  %v37_v26 = vsel %vm11_vm1, %v9_v1, %v35_v24 }
  0x23   :  { %v39_v27 = vadd.f32 1e-12, %v37_v26 }
  0x24   :  { %40 = vst [vmem:[%s81_s1] sm:$0xff] %v38_v25 }
  0x25   :  { %41 = vst [vmem:[%s81_s1 + $0x8] sm:$0xff] %v39_v27 }

</bundles_post_ra>
